<compile_context>
chip_gen: v6e
topology: v6e:2x2x1
jax: 0.10.0
libtpu: 0.0.40
codegen_flags: <defaults>
</compile_context>

<pallas_src>
import functools

import jax
import jax.numpy as jnp
import numpy as np
from jax.experimental import pallas as pl
from jax.experimental.pallas import tpu as pltpu


def _transition_kernel(x_ref, scale_ref, shift_ref, w_ref, pw_ref, o_ref,
                       hp_ref, y_ref):
    """One image per grid step.

    x_ref:     (Cin, H, W)    f32, one NCHW image (lane dim = W)
    scale_ref: (Cin, 1, 1)    folded BN scale  = gamma / sqrt(var + eps)
    shift_ref: (Cin, 1, 1)    folded BN shift  = beta - mean * scale
    w_ref:     (Cout, Cin)    1x1 conv weight (mxu_dtype)
    pw_ref:    (W, Wo)        horizontal 2->1 pool matrix, 0.25 entries (f32)
    o_ref:     (Cout, Ho*Wo)  flattened NCHW output block (lane-dense)
    hp_ref:    (Cin, Ho, Wo)  scratch: pooled activations (mxu_dtype)
    y_ref:     (Cin, Ho*Wo)   scratch: lane-dense conv RHS (mxu_dtype)
    """
    Cin, H, W = x_ref.shape
    Ho, Wo = H // 2, W // 2

    s = scale_ref[...]                                   # (Cin, 1, 1) - hoisted
    t = shift_ref[...]

    # Even / odd image rows as sublane-strided ref loads (no unaligned lane
    # slicing).  BN affine + ReLU run on the whole planes, then the vertical
    # 2->1 pool is a plain add; the 1/4 averaging factor lives inside `pw`.
    top = x_ref[:, pl.ds(0, Ho, stride=2), :]            # rows 0,2,...  (Cin, Ho, W)
    bot = x_ref[:, pl.ds(1, Ho, stride=2), :]            # rows 1,3,...  (Cin, Ho, W)
    yv = jnp.maximum(top * s + t, 0.0) + jnp.maximum(bot * s + t, 0.0)

    # Horizontal 2->1 pool: ONE batched matmul with M = Cin*Ho (the reshape is
    # a free relabel when Ho % 8 == 0; otherwise Mosaic relayouts a 4x-reduced
    # tensor).  Kept in f32 so activations are rounded to mxu_dtype only once.
    hp = jnp.dot(yv.reshape(Cin * Ho, W), pw_ref[...],
                 preferred_element_type=jnp.float32)     # (Cin*Ho, Wo)
    hp_ref[...] = hp.reshape(Cin, Ho, Wo).astype(hp_ref.dtype)

    # Relayout the pooled activations into a lane-dense (Cin, Ho*Wo) conv RHS.
    # Static offsets, body is two ref ops only -> no live-range growth, so a
    # static Python loop is fine here.
    for i in range(Ho):
        y_ref[:, pl.ds(i * Wo, Wo)] = hp_ref[:, i, :]

    # ONE 1x1-conv matmul (M=Cout, K=Cin, N=Ho*Wo) + ONE lane-dense store.
    out = jnp.dot(w_ref[...], y_ref[...], preferred_element_type=jnp.float32)
    o_ref[...] = out.astype(o_ref.dtype)


def _make_wpool(W):
    """(W, Wo) matrix with 0.25 at rows (2j, 2j+1) of column j (exact in f32/bf16)."""
    Wo = W // 2
    p = np.zeros((W, Wo), dtype=np.float32)
    cols = np.arange(Wo)
    p[2 * cols, cols] = 0.25
    p[2 * cols + 1, cols] = 0.25
    return jnp.asarray(p)


@functools.partial(jax.jit, static_argnames=("eps", "mxu_dtype"))
def transition_forward(x_nchw, gamma, beta, conv_w, eps=1e-5, mxu_dtype=jnp.bfloat16):
    """x_nchw: (N, Cin, H, W); conv_w: (Cout, Cin) or (Cout, Cin, 1, 1). Returns NCHW."""
    N, Cin, H, W = x_nchw.shape
    Cout = conv_w.shape[0]
    assert H % 2 == 0 and W % 2 == 0, "DenseNet transition expects even H, W"
    Ho, Wo = H // 2, W // 2

    x32 = x_nchw.astype(jnp.float32)

    # --- BN batch statistics (training mode, biased variance) ---
    # Single fused HBM pass, but with a per-channel pivot (shifted sums) so the
    # E[d^2] - E[d]^2 form stays well conditioned even when |mean| >> std.
    cnt = N * H * W
    pivot = x32[0:1, :, 0:1, 0:1]                        # (1, Cin, 1, 1)
    d = x32 - pivot
    s1 = jnp.sum(d, axis=(0, 2, 3))
    s2 = jnp.sum(d * d, axis=(0, 2, 3))
    m1 = s1 / cnt
    mean = pivot.reshape(Cin) + m1
    var = jnp.maximum(s2 / cnt - m1 * m1, 0.0)
    scale = gamma.astype(jnp.float32) / jnp.sqrt(var + eps)   # (Cin,)
    shift = beta.astype(jnp.float32) - mean * scale           # (Cin,)

    w_mx = conv_w.reshape(Cout, Cin).astype(mxu_dtype)
    pw = _make_wpool(W)                                       # f32, exact 0.25

    out_flat = pl.pallas_call(
        _transition_kernel,
        out_shape=jax.ShapeDtypeStruct((N, Cout, Ho * Wo), jnp.float32),
        grid_spec=pltpu.PrefetchScalarGridSpec(
            num_scalar_prefetch=0,
            grid=(N,),
            in_specs=[
                # whole image, 3-D so rows are sublane slices; HBM read stays contiguous
                pl.BlockSpec((pl.Squeezed(), Cin, H, W), lambda n: (n, 0, 0, 0)),
                pl.BlockSpec((Cin, 1, 1), lambda n: (0, 0, 0)),
                pl.BlockSpec((Cin, 1, 1), lambda n: (0, 0, 0)),
                pl.BlockSpec((Cout, Cin), lambda n: (0, 0)),
                pl.BlockSpec((W, Wo), lambda n: (0, 0)),
            ],
            out_specs=pl.BlockSpec((pl.Squeezed(), Cout, Ho * Wo),
                                   lambda n: (n, 0, 0)),
            scratch_shapes=[
                pltpu.VMEM((Cin, Ho, Wo), mxu_dtype),     # pooled activations
                pltpu.VMEM((Cin, Ho * Wo), mxu_dtype),    # lane-dense conv RHS
            ],
        ),
        # batch axis is independent -> lets v7x split it across its two TCs
        compiler_params=pltpu.CompilerParams(dimension_semantics=("parallel",)),
    )(x32, scale.reshape(Cin, 1, 1), shift.reshape(Cin, 1, 1), w_mx, pw)

    # Output is already NCHW; just un-flatten the spatial axis (free reshape).
    return out_flat.reshape(N, Cout, Ho, Wo)


def _reference(x, gamma, beta, conv_w, eps=1e-5):
    """Pure-JAX, f32, PyTorch-faithful reference: avg_pool2d(conv1x1(relu(bn(x))), 2)."""
    mean = jnp.mean(x, axis=(0, 2, 3))
    var = jnp.mean(jnp.square(x - mean[None, :, None, None]), axis=(0, 2, 3))
    xn = (x - mean[None, :, None, None]) / jnp.sqrt(var[None, :, None, None] + eps)
    y = jnp.maximum(xn * gamma[None, :, None, None] + beta[None, :, None, None], 0.0)
    w2 = conv_w.reshape(conv_w.shape[0], -1)
    z = jnp.einsum("nchw,oc->nohw", y, w2)
    Nb, Co, H, W = z.shape
    return z.reshape(Nb, Co, H // 2, 2, W // 2, 2).mean(axis=(3, 5))


if __name__ == "__main__":
    N, Cin, H, W = 2, 4, 16, 16
    Cout = 2  # DenseNet transition compresses channels

    key = jax.random.PRNGKey(0)
    k1, k2, k3, k4 = jax.random.split(key, 4)
    x = jax.random.normal(k1, (N, Cin, H, W), dtype=jnp.float32)
    gamma = jax.random.uniform(k2, (Cin,), minval=0.5, maxval=1.5, dtype=jnp.float32)
    beta = jax.random.normal(k3, (Cin,), dtype=jnp.float32) * 0.1
    conv_w = jax.random.normal(k4, (Cout, Cin), dtype=jnp.float32) / np.sqrt(Cin)

    ref = _reference(x, gamma, beta, conv_w)

    # Strict check on the f32 MXU path.
    out_f32 = jax.block_until_ready(
        transition_forward(x, gamma, beta, conv_w, mxu_dtype=jnp.float32))
    assert out_f32.shape == (N, Cout, H // 2, W // 2), out_f32.shape
    np.testing.assert_allclose(np.asarray(out_f32), np.asarray(ref),
                               rtol=1e-5, atol=1e-5)

    # Default bf16-MXU path (throughput path on v5e/v6e/v7x); activations and
    # weights are rounded to bf16 once, so a loose tolerance suffices.
    out_bf16 = jax.block_until_ready(transition_forward(x, gamma, beta, conv_w))
    assert out_bf16.shape == (N, Cout, H // 2, W // 2), out_bf16.shape
    np.testing.assert_allclose(np.asarray(out_bf16), np.asarray(ref),
                               rtol=1e-1, atol=1e-1)

    print("KERNEL_OK")
</pallas_src>

<mosaic_0001>
module attributes {stable_mosaic.version = 11 : i64} {
  func.func @_transition_kernel(%arg0: i32, %arg1: memref<1x4x16x16xf32, #tpu.memory_space<vmem>>, %arg2: memref<4x1x1xf32, #tpu.memory_space<vmem>>, %arg3: memref<4x1x1xf32, #tpu.memory_space<vmem>>, %arg4: memref<2x4xf32, #tpu.memory_space<vmem>>, %arg5: memref<16x8xf32, #tpu.memory_space<vmem>>, %arg6: memref<1x2x64xf32, #tpu.memory_space<vmem>>, %arg7: memref<4x8x8xf32, #tpu.memory_space<vmem>>, %arg8: memref<4x64xf32, #tpu.memory_space<vmem>>) attributes {dimension_semantics = [#tpu.dimension_semantics<parallel>], iteration_bounds = array<i64: 2>, scalar_prefetch = 0 : i64, scratch_operands = 2 : i64, tpu.core_type = #tpu.core_type<tc>, window_params = [{transform_indices = @transform_0, window_bounds = array<i64: 1, 4, 16, 16>}, {pipeline_mode = #tpu.pipeline_mode<synchronous>, transform_indices = @transform_1, window_bounds = array<i64: 4, 1, 1>}, {pipeline_mode = #tpu.pipeline_mode<synchronous>, transform_indices = @transform_2, window_bounds = array<i64: 4, 1, 1>}, {pipeline_mode = #tpu.pipeline_mode<synchronous>, transform_indices = @transform_3, window_bounds = array<i64: 2, 4>}, {pipeline_mode = #tpu.pipeline_mode<synchronous>, transform_indices = @transform_4, window_bounds = array<i64: 16, 8>}, {transform_indices = @transform_5, window_bounds = array<i64: 1, 2, 64>}]} {
    %c0 = arith.constant 0 : index
    %c0_0 = arith.constant 0 : index
    %c0_1 = arith.constant 0 : index
    %0 = vector.load %arg2[%c0, %c0_0, %c0_1] : memref<4x1x1xf32, #tpu.memory_space<vmem>>, vector<4x1x1xf32>
    %c0_2 = arith.constant 0 : index
    %c0_3 = arith.constant 0 : index
    %c0_4 = arith.constant 0 : index
    %1 = vector.load %arg3[%c0_2, %c0_3, %c0_4] : memref<4x1x1xf32, #tpu.memory_space<vmem>>, vector<4x1x1xf32>
    %c0_5 = arith.constant 0 : index
    %c0_6 = arith.constant 0 : index
    %c0_7 = arith.constant 0 : index
    %c0_8 = arith.constant 0 : index
    %2 = tpu.strided_load %arg1[%c0_5, %c0_6, %c0_7, %c0_8] {strides = array<i32: 1, 1, 2, 1>} : memref<1x4x16x16xf32, #tpu.memory_space<vmem>>, vector<1x4x8x16xf32>
    %3 = vector.shape_cast %2 : vector<1x4x8x16xf32> to vector<4x8x16xf32>
    %c0_9 = arith.constant 0 : index
    %c0_10 = arith.constant 0 : index
    %c1 = arith.constant 1 : index
    %c0_11 = arith.constant 0 : index
    %4 = tpu.strided_load %arg1[%c0_9, %c0_10, %c1, %c0_11] {strides = array<i32: 1, 1, 2, 1>} : memref<1x4x16x16xf32, #tpu.memory_space<vmem>>, vector<1x4x8x16xf32>
    %5 = vector.shape_cast %4 : vector<1x4x8x16xf32> to vector<4x8x16xf32>
    %6 = vector.broadcast %0 : vector<4x1x1xf32> to vector<4x8x16xf32>
    %7 = arith.mulf %3, %6 : vector<4x8x16xf32>
    %8 = vector.broadcast %1 : vector<4x1x1xf32> to vector<4x8x16xf32>
    %9 = arith.addf %7, %8 : vector<4x8x16xf32>
    %cst = arith.constant 0.000000e+00 : f32
    %10 = vector.broadcast %cst : f32 to vector<4x8x16xf32>
    %11 = arith.maximumf %9, %10 : vector<4x8x16xf32>
    %12 = vector.broadcast %0 : vector<4x1x1xf32> to vector<4x8x16xf32>
    %13 = arith.mulf %5, %12 : vector<4x8x16xf32>
    %14 = vector.broadcast %1 : vector<4x1x1xf32> to vector<4x8x16xf32>
    %15 = arith.addf %13, %14 : vector<4x8x16xf32>
    %cst_12 = arith.constant 0.000000e+00 : f32
    %16 = vector.broadcast %cst_12 : f32 to vector<4x8x16xf32>
    %17 = arith.maximumf %15, %16 : vector<4x8x16xf32>
    %18 = arith.addf %11, %17 : vector<4x8x16xf32>
    %19 = vector.shape_cast %18 : vector<4x8x16xf32> to vector<32x16xf32>
    %c0_13 = arith.constant 0 : index
    %c0_14 = arith.constant 0 : index
    %20 = vector.load %arg5[%c0_13, %c0_14] : memref<16x8xf32, #tpu.memory_space<vmem>>, vector<16x8xf32>
    %cst_15 = arith.constant dense<0.000000e+00> : vector<32x8xf32>
    %21 = tpu.matmul %19, %20, %cst_15 {dimension_numbers = #tpu.dot_dimension_numbers<[1], [0], [0], [1], [0, 0, 1, 1], [], []>} : vector<32x16xf32>, vector<16x8xf32>, vector<32x8xf32> -> vector<32x8xf32>
    %22 = vector.shape_cast %21 : vector<32x8xf32> to vector<4x8x8xf32>
    %c0_16 = arith.constant 0 : index
    %c0_17 = arith.constant 0 : index
    %c0_18 = arith.constant 0 : index
    %23 = vector.load %arg7[%c0_16, %c0_17, %c0_18] : memref<4x8x8xf32, #tpu.memory_space<vmem>>, vector<4x8x8xf32>
    tpu.vector_store %arg7[%c0_16, %c0_17, %c0_18], %22 {strides = array<i32>} : memref<4x8x8xf32, #tpu.memory_space<vmem>>, vector<4x8x8xf32>,
    %c0_19 = arith.constant 0 : index
    %c0_20 = arith.constant 0 : index
    %c0_21 = arith.constant 0 : index
    %24 = vector.load %arg7[%c0_19, %c0_20, %c0_21] : memref<4x8x8xf32, #tpu.memory_space<vmem>>, vector<4x1x8xf32>
    %25 = vector.shape_cast %24 : vector<4x1x8xf32> to vector<4x8xf32>
    %c0_22 = arith.constant 0 : index
    %c0_23 = arith.constant 0 : index
    %26 = vector.load %arg8[%c0_22, %c0_23] : memref<4x64xf32, #tpu.memory_space<vmem>>, vector<4x8xf32>
    tpu.vector_store %arg8[%c0_22, %c0_23], %25 {strides = array<i32>} : memref<4x64xf32, #tpu.memory_space<vmem>>, vector<4x8xf32>,
    %c0_24 = arith.constant 0 : index
    %c1_25 = arith.constant 1 : index
    %c0_26 = arith.constant 0 : index
    %27 = vector.load %arg7[%c0_24, %c1_25, %c0_26] : memref<4x8x8xf32, #tpu.memory_space<vmem>>, vector<4x1x8xf32>
    %28 = vector.shape_cast %27 : vector<4x1x8xf32> to vector<4x8xf32>
    %c0_27 = arith.constant 0 : index
    %c8 = arith.constant 8 : index
    %29 = vector.load %arg8[%c0_27, %c8] : memref<4x64xf32, #tpu.memory_space<vmem>>, vector<4x8xf32>
    tpu.vector_store %arg8[%c0_27, %c8], %28 {strides = array<i32>} : memref<4x64xf32, #tpu.memory_space<vmem>>, vector<4x8xf32>,
    %c0_28 = arith.constant 0 : index
    %c2 = arith.constant 2 : index
    %c0_29 = arith.constant 0 : index
    %30 = vector.load %arg7[%c0_28, %c2, %c0_29] : memref<4x8x8xf32, #tpu.memory_space<vmem>>, vector<4x1x8xf32>
    %31 = vector.shape_cast %30 : vector<4x1x8xf32> to vector<4x8xf32>
    %c0_30 = arith.constant 0 : index
    %c16 = arith.constant 16 : index
    %32 = vector.load %arg8[%c0_30, %c16] : memref<4x64xf32, #tpu.memory_space<vmem>>, vector<4x8xf32>
    tpu.vector_store %arg8[%c0_30, %c16], %31 {strides = array<i32>} : memref<4x64xf32, #tpu.memory_space<vmem>>, vector<4x8xf32>,
    %c0_31 = arith.constant 0 : index
    %c3 = arith.constant 3 : index
    %c0_32 = arith.constant 0 : index
    %33 = vector.load %arg7[%c0_31, %c3, %c0_32] : memref<4x8x8xf32, #tpu.memory_space<vmem>>, vector<4x1x8xf32>
    %34 = vector.shape_cast %33 : vector<4x1x8xf32> to vector<4x8xf32>
    %c0_33 = arith.constant 0 : index
    %c24 = arith.constant 24 : index
    %35 = vector.load %arg8[%c0_33, %c24] : memref<4x64xf32, #tpu.memory_space<vmem>>, vector<4x8xf32>
    tpu.vector_store %arg8[%c0_33, %c24], %34 {strides = array<i32>} : memref<4x64xf32, #tpu.memory_space<vmem>>, vector<4x8xf32>,
    %c0_34 = arith.constant 0 : index
    %c4 = arith.constant 4 : index
    %c0_35 = arith.constant 0 : index
    %36 = vector.load %arg7[%c0_34, %c4, %c0_35] : memref<4x8x8xf32, #tpu.memory_space<vmem>>, vector<4x1x8xf32>
    %37 = vector.shape_cast %36 : vector<4x1x8xf32> to vector<4x8xf32>
    %c0_36 = arith.constant 0 : index
    %c32 = arith.constant 32 : index
    %38 = vector.load %arg8[%c0_36, %c32] : memref<4x64xf32, #tpu.memory_space<vmem>>, vector<4x8xf32>
    tpu.vector_store %arg8[%c0_36, %c32], %37 {strides = array<i32>} : memref<4x64xf32, #tpu.memory_space<vmem>>, vector<4x8xf32>,
    %c0_37 = arith.constant 0 : index
    %c5 = arith.constant 5 : index
    %c0_38 = arith.constant 0 : index
    %39 = vector.load %arg7[%c0_37, %c5, %c0_38] : memref<4x8x8xf32, #tpu.memory_space<vmem>>, vector<4x1x8xf32>
    %40 = vector.shape_cast %39 : vector<4x1x8xf32> to vector<4x8xf32>
    %c0_39 = arith.constant 0 : index
    %c40 = arith.constant 40 : index
    %41 = vector.load %arg8[%c0_39, %c40] : memref<4x64xf32, #tpu.memory_space<vmem>>, vector<4x8xf32>
    tpu.vector_store %arg8[%c0_39, %c40], %40 {strides = array<i32>} : memref<4x64xf32, #tpu.memory_space<vmem>>, vector<4x8xf32>,
    %c0_40 = arith.constant 0 : index
    %c6 = arith.constant 6 : index
    %c0_41 = arith.constant 0 : index
    %42 = vector.load %arg7[%c0_40, %c6, %c0_41] : memref<4x8x8xf32, #tpu.memory_space<vmem>>, vector<4x1x8xf32>
    %43 = vector.shape_cast %42 : vector<4x1x8xf32> to vector<4x8xf32>
    %c0_42 = arith.constant 0 : index
    %c48 = arith.constant 48 : index
    %44 = vector.load %arg8[%c0_42, %c48] : memref<4x64xf32, #tpu.memory_space<vmem>>, vector<4x8xf32>
    tpu.vector_store %arg8[%c0_42, %c48], %43 {strides = array<i32>} : memref<4x64xf32, #tpu.memory_space<vmem>>, vector<4x8xf32>,
    %c0_43 = arith.constant 0 : index
    %c7 = arith.constant 7 : index
    %c0_44 = arith.constant 0 : index
    %45 = vector.load %arg7[%c0_43, %c7, %c0_44] : memref<4x8x8xf32, #tpu.memory_space<vmem>>, vector<4x1x8xf32>
    %46 = vector.shape_cast %45 : vector<4x1x8xf32> to vector<4x8xf32>
    %c0_45 = arith.constant 0 : index
    %c56 = arith.constant 56 : index
    %47 = vector.load %arg8[%c0_45, %c56] : memref<4x64xf32, #tpu.memory_space<vmem>>, vector<4x8xf32>
    tpu.vector_store %arg8[%c0_45, %c56], %46 {strides = array<i32>} : memref<4x64xf32, #tpu.memory_space<vmem>>, vector<4x8xf32>,
    %c0_46 = arith.constant 0 : index
    %c0_47 = arith.constant 0 : index
    %48 = vector.load %arg4[%c0_46, %c0_47] : memref<2x4xf32, #tpu.memory_space<vmem>>, vector<2x4xf32>
    %c0_48 = arith.constant 0 : index
    %c0_49 = arith.constant 0 : index
    %49 = vector.load %arg8[%c0_48, %c0_49] : memref<4x64xf32, #tpu.memory_space<vmem>>, vector<4x64xf32>
    %cst_50 = arith.constant dense<0.000000e+00> : vector<2x64xf32>
    %50 = tpu.matmul %48, %49, %cst_50 {dimension_numbers = #tpu.dot_dimension_numbers<[1], [0], [0], [1], [0, 0, 1, 1], [], []>} : vector<2x4xf32>, vector<4x64xf32>, vector<2x64xf32> -> vector<2x64xf32>
    %c0_51 = arith.constant 0 : index
    %c0_52 = arith.constant 0 : index
    %c0_53 = arith.constant 0 : index
    %51 = vector.load %arg6[%c0_51, %c0_52, %c0_53] : memref<1x2x64xf32, #tpu.memory_space<vmem>>, vector<1x2x64xf32>
    %52 = vector.shape_cast %51 : vector<1x2x64xf32> to vector<2x64xf32>
    %53 = vector.shape_cast %50 : vector<2x64xf32> to vector<1x2x64xf32>
    tpu.vector_store %arg6[%c0_51, %c0_52, %c0_53], %53 {strides = array<i32>} : memref<1x2x64xf32, #tpu.memory_space<vmem>>, vector<1x2x64xf32>,
    return
  }
  func.func @transform_0(%arg0: i32) -> (i32, i32, i32, i32) {
    %c0_i32 = arith.constant 0 : i32
    %c0_i32_0 = arith.constant 0 : i32
    %c0_i32_1 = arith.constant 0 : i32
    %c0_i32_2 = arith.constant 0 : i32
    return %arg0, %c0_i32, %c0_i32_0, %c0_i32_1 : i32, i32, i32, i32
  }
  func.func @transform_1(%arg0: i32) -> (i32, i32, i32) {
    %c0_i32 = arith.constant 0 : i32
    %c0_i32_0 = arith.constant 0 : i32
    %c0_i32_1 = arith.constant 0 : i32
    %c0_i32_2 = arith.constant 0 : i32
    return %c0_i32, %c0_i32_0, %c0_i32_1 : i32, i32, i32
  }
  func.func @transform_2(%arg0: i32) -> (i32, i32, i32) {
    %c0_i32 = arith.constant 0 : i32
    %c0_i32_0 = arith.constant 0 : i32
    %c0_i32_1 = arith.constant 0 : i32
    %c0_i32_2 = arith.constant 0 : i32
    return %c0_i32, %c0_i32_0, %c0_i32_1 : i32, i32, i32
  }
  func.func @transform_3(%arg0: i32) -> (i32, i32) {
    %c0_i32 = arith.constant 0 : i32
    %c0_i32_0 = arith.constant 0 : i32
    %c0_i32_1 = arith.constant 0 : i32
    return %c0_i32, %c0_i32_0 : i32, i32
  }
  func.func @transform_4(%arg0: i32) -> (i32, i32) {
    %c0_i32 = arith.constant 0 : i32
    %c0_i32_0 = arith.constant 0 : i32
    %c0_i32_1 = arith.constant 0 : i32
    return %c0_i32, %c0_i32_0 : i32, i32
  }
  func.func @transform_5(%arg0: i32) -> (i32, i32, i32) {
    %c0_i32 = arith.constant 0 : i32
    %c0_i32_0 = arith.constant 0 : i32
    %c0_i32_1 = arith.constant 0 : i32
    return %arg0, %c0_i32, %c0_i32_0 : i32, i32, i32
  }
}

</mosaic_0001>

<bundles_post_ra>
// kernel: transition_forward.1
= control target key start
LH: loop header
LB: loop body
LE: loop exit
PB: predicated region body
PF: predicated region fallthrough
CT: control target
= control target key end

     0   :  { %s862_s18 = smov 0   ;;  %s949_s0 = inlined_call_operand.vmem [shape: f32[2,4,16,16], index: 0, kind: input, shape index: {}]   ;;  %s950_s1 = inlined_call_operand.vmem [shape: f32[4,1,1], index: 1, kind: input, shape index: {}]   ;;  %s951_s2 = inlined_call_operand.vmem [shape: f32[4,1,1], index: 2, kind: input, shape index: {}]   ;;  %s952_s3 = inlined_call_operand.vmem [shape: f32[2,4], index: 3, kind: input, shape index: {}]   ;;  %s953_s4 = inlined_call_operand.vmem [shape: f32[16,8], index: 4, kind: input, shape index: {}]   ;;  %s954_s5 = inlined_call_operand.vmem [shape: f32[2,2,64], index: 5, kind: output, shape index: {}]  }
   0x1 LB: > { %s739_s19 = sadd.s32 4294967295, %s820_s18   ;;  %p743_p0 = scmp.ge.s32.totalorder %s820_s18, 1  ;;  %s820_s18 = sphi %s862_s18, %s15_s18  }
   0x2   : > { %p187_p1 = scmp.lt.s32.totalorder %s820_s18, 3 }
   0x4   : > { %p188_p2 = pnand %p743_p0, %p187_p1 }
   0x5   : > { %p214_p3 = scmp.lt.s32.totalorder (!%p188_p2), %s739_s19, 1  ;;  %s823_s21 = smov (!%p188_p2), 16  }
   0x6   : > { %191 = sbr.rel (%p188_p2) target bundleno = 694 (0x2b6), region = 40  ;;  %s824_s22 = smov (!%p188_p2), 8  }
   0x7   : > { %s825_s23 = smov (!%p188_p2), 32   ;;  %s826_s24 = smov (!%p188_p2), 24  }
   0x8   : > { %s828_s25 = smov (!%p188_p2), 48   ;;  %s829_s26 = smov (!%p188_p2), 40  }
   0x9   : > { %s831_s27 = smov (!%p188_p2), 56  }
   0xb   : > { %v758_v0 = vld [vmem:[%s951_s2] ss:$0 sm:$0xff]  ;;  %v822_v2 = vmov 0   ;;  %v759_v3 = vld [vmem:[%s951_s2 + $0x1] ss:$0 sm:$0xff]  ;;  %v347_v5 = vld [vmem:[%s953_s4 + $0x8] sm:$0xff] }
   0xc   : > { %v754_v1 = vld [vmem:[%s950_s1] ss:$0 sm:$0xff]  ;;  %813 = vset.pattern.permute.xlu1 %v822_v2  ;;  %812 = vset.pattern.permute.xlu0 %v822_v2  ;;  %v755_v4 = vld [vmem:[%s950_s1 + $0x1] ss:$0 sm:$0xff]  ;;  %v757_v6 = vld [vmem:[%s950_s1 + $0x3] ss:$0 sm:$0xff] }
   0xd   : > { %307 = vperm.xlu1 %813, %v758_v0   ;;  %267 = vperm.xlu0 %812, %v754_v1   ;;  %v756_v7 = vld [vmem:[%s950_s1 + $0x2] ss:$0 sm:$0xff]  ;;  %v761_v9 = vld [vmem:[%s951_s2 + $0x3] ss:$0 sm:$0xff]  ;;  %s956_s19 = smov (!%p214_p3, %s739_s19), 1  ;;  %vm348_vm0 = vcmask 130048  }
   0xe   : > { %779 = vmatprep.subr.mxu0 %v347_v5  ;;  %v346_v8 = vld [vmem:[%s953_s4] sm:$0xff]  ;;  %s770_s15 = sshll.u32 %s956_s19, 6  ;;  %vm446_vm1 = vcmask 64512   ;;  %vm460_vm2 = vcmask 1041409   ;;  %vm463_vm3 = vcmask 1042434   ;;  %vm466_vm4 = vcmask 1043459  }
   0xf   : > { %780 = vmatpush3.msra.mxu0 %v347_v5  ;;  %v760_v10 = vld [vmem:[%s951_s2 + $0x2] ss:$0 sm:$0xff]  ;;  %s218_s20 = scalar_lea.vmem %s949_s0, %s770_s15  ;;  %vm469_vm5 = vcmask 60416   ;;  %vm830_vm6 = vmmov 0   ;;  %vm488_vm7 = vcmask 126016   ;;  %vm507_vm8 = vcmask 191616  }
  0x10   : > { %781 = vmatprep.subr.mxu0 %v346_v8  ;;  %v231_v11 = vld [vmem:[%s218_s20] ss:$2 sm:$0xff]  ;;  %v750_v12 = vld [vmem:[%s218_s20 + $0x1] ss:$2 sm:$0xff]  ;;  %v747_v17 = vld [vmem:[%s218_s20 + $0x10] ss:$2 sm:$0xff] }
  0x11   : > { %311 = vperm.xlu1 %813, %v759_v3   ;;  %271 = vperm.xlu0 %812, %v755_v4   ;;  %v751_v18 = vld [vmem:[%s218_s20 + $0x11] ss:$2 sm:$0xff]  ;;  %v749_v29 = vld [vmem:[%s218_s20 + $0x30] ss:$2 sm:$0xff]  ;;  %v748_v34 = vld [vmem:[%s218_s20 + $0x20] ss:$2 sm:$0xff] }
  0x12   : > { %782 = vmatpush3.msra.mxu0 %v346_v8  ;;  %v753_v32 = vld [vmem:[%s218_s20 + $0x31] ss:$2 sm:$0xff]  ;;  %v752_v35 = vld [vmem:[%s218_s20 + $0x21] ss:$2 sm:$0xff]  ;;  %vm526_vm9 = vcmask 257216   ;;  %vm545_vm10 = vcmask 322816  }
  0x13   : > { %vm564_vm11 = vcmask 388416   ;;  %vm583_vm12 = vcmask 454016   ;;  %vm602_vm13 = vcmask 519616   ;;  %vm610_vm14 = vcmask 1043456   ;;  %s746_s30 = sshll.u32 %s956_s19, 1 }
  0x14   : > { %vm606_vm15 = vcmask 31744   ;;  %s222_s8 = scalar_lea.vmem %s954_s5, %s746_s30 }
  0x15   : > { %279 = vperm.xlu1 %813, %v757_v6   ;;  %275 = vperm.xlu0 %812, %v756_v7  }
  0x19   : > { %319 = vperm.xlu1 %813, %v761_v9   ;;  %315 = vperm.xlu0 %812, %v760_v10  }
  0x88   : > { %v308_v13 = vpop.permute.xlu1 %307  ;;  %v268_v14 = vpop.permute.xlu0 %267 }
  0x89   : > { %v282_v15 = vmul.f32 %v268_v14, %v231_v11  ;;  %v330_v16 = vmul.f32 %v750_v12, %v268_v14 }
  0x8b   : > { %v322_v19 = vadd.f32 %v308_v13, %v282_v15  ;;  %v334_v20 = vadd.f32 %v330_v16, %v308_v13 }
  0x8c   : > { %v312_v21 = vpop.permute.xlu1 %311  ;;  %v272_v22 = vpop.permute.xlu0 %271 }
  0x8d   : > { %v283_v23 = vmul.f32 %v747_v17, %v272_v22  ;;  %v331_v24 = vmul.f32 %v751_v18, %v272_v22  ;;  %v326_v25 = vmax.f32 %v322_v19, 0.0  ;;  %v338_v26 = vmax.f32 %v334_v20, 0.0 }
  0x8f   : > { %v323_v27 = vadd.f32 %v312_v21, %v283_v23  ;;  %v335_v28 = vadd.f32 %v331_v24, %v312_v21  ;;  %v342_v30 = vadd.f32 %v338_v26, %v326_v25 }
  0x90   : > { %v280_v31 = vpop.permute.xlu1 %279  ;;  %v276_v33 = vpop.permute.xlu0 %275 }
  0x91   : > { %v327_v36 = vmax.f32 %v323_v27, 0.0  ;;  %v339_v37 = vmax.f32 %v335_v28, 0.0  ;;  %783 = vmatprep.mubr.msk.f32.mxu0 %vm348_vm0, %v342_v30  ;;  %v285_v38 = vmul.f32 %v749_v29, %v280_v31  ;;  %v333_v40 = vmul.f32 %v753_v32, %v280_v31 }
  0x92   : > { %v284_v41 = vmul.f32 %v748_v34, %v276_v33  ;;  %v332_v42 = vmul.f32 %v752_v35, %v276_v33 }
  0x93   : > { %v343_v39 = vadd.f32 %v339_v37, %v327_v36 }
  0x94   : > { %v320_v43 = vpop.permute.xlu1 %319  ;;  %v316_v44 = vpop.permute.xlu0 %315 }
  0x95   : > { %v325_v45 = vadd.f32 %v320_v43, %v285_v38  ;;  %v337_v46 = vadd.f32 %v333_v40, %v320_v43  ;;  %v324_v47 = vadd.f32 %v316_v44, %v284_v41  ;;  %v336_v48 = vadd.f32 %v332_v42, %v316_v44  ;;  %784 = vmatmul.mubr.msk.f32.vlgmr.msra.gmra.mxu0 %vm348_vm0, %v343_v39 }
  0x97   : > { %v329_v49 = vmax.f32 %v325_v45, 0.0  ;;  %v341_v50 = vmax.f32 %v337_v46, 0.0  ;;  %v328_v51 = vmax.f32 %v324_v47, 0.0  ;;  %v340_v52 = vmax.f32 %v336_v48, 0.0 }
  0x99   : > { %v345_v53 = vadd.f32 %v341_v50, %v329_v49  ;;  %v344_v54 = vadd.f32 %v340_v52, %v328_v51 }
  0x9b   : > { %786 = vmatprep.mubr.msk.f32.mxu0 %vm348_vm0, %v344_v54 }
  0x9c   : > { %787 = vmatmul.mubr.msk.f32.gmra.mxu0 %vm348_vm0, %v345_v53  ;;  %vm684_vm0 = vcmask 517120  }
 0x155   : > { %v785_v55 = vpop.f32.mrf.mxu0 }
 0x156   : > { %448 = vst.msk [vmem:[#allocation2 + $0x8] sm:$0xff] %vm446_vm1, %v785_v55 }
 0x157   : > { %v427_v56 = vpop.f32.mrf.mxu0 }
 0x158   : > { %447 = vst.msk [vmem:[#allocation2] sm:$0xff] %vm446_vm1, %v427_v56 }
 0x15c   : > { %v788_v57 = vpop.f32.mrf.mxu0 }
 0x15d   : > { %450 = vst.msk [vmem:[#allocation2 + $0x18] sm:$0xff] %vm446_vm1, %v788_v57  ;;  %v491_v59 = vld [vmem:[#allocation2 + $0xa] sm:$0x1]  ;;  %v472_v60 = vld [vmem:[#allocation2 + $0x9] sm:$0x1] }
 0x15e   : > { %v437_v58 = vpop.f32.mrf.mxu0  ;;  %v529_v61 = vld [vmem:[#allocation2 + $0xc] sm:$0x1]  ;;  %v510_v62 = vld [vmem:[#allocation2 + $0xb] sm:$0x1]  ;;  %v498_v63 = vrot.slane %v491_v59, 7  ;;  %v479_v0 = vrot.slane %v472_v60, 7 }
 0x15f   : > { %449 = vst.msk [vmem:[#allocation2 + $0x10] sm:$0xff] %vm446_vm1, %v437_v58  ;;  %v490_v1 = vld [vmem:[#allocation2 + $0x2] sm:$0x1]  ;;  %v471_v2 = vld [vmem:[#allocation2 + $0x1] sm:$0x1]  ;;  %v536_v4 = vrot.slane %v529_v61, 7 }
 0x160   : > { %v528_v3 = vld [vmem:[#allocation2 + $0x4] sm:$0x1]  ;;  %v517_v5 = vrot.slane %v510_v62, 7  ;;  %v567_v6 = vld [vmem:[#allocation2 + $0xe] sm:$0x1]  ;;  %v499_v13 = vsel %vm460_vm2, %v498_v63, %v490_v1  ;;  %v480_v15 = vsel %vm460_vm2, %v479_v0, %v471_v2 }
 0x161   : > { %v548_v7 = vld [vmem:[#allocation2 + $0xd] sm:$0x1]  ;;  %v509_v10 = vld [vmem:[#allocation2 + $0x3] sm:$0x1]  ;;  %v452_v11 = vld [vmem:[#allocation2 + $0x8] sm:$0x1]  ;;  %v537_v32 = vsel %vm460_vm2, %v536_v4, %v528_v3 }
 0x162   : > { %v574_v21 = vrot.slane %v567_v6, 7  ;;  %v566_v25 = vld [vmem:[#allocation2 + $0x6] sm:$0x1]  ;;  %v547_v27 = vld [vmem:[#allocation2 + $0x5] sm:$0x1]  ;;  %v555_v28 = vrot.slane %v548_v7, 7  ;;  %v518_v37 = vsel %vm460_vm2, %v517_v5, %v509_v10 }
 0x163   : > { %v586_v38 = vld [vmem:[#allocation2 + $0xf] sm:$0x1]  ;;  %v451_v39 = vld [vmem:[#allocation2] sm:$0x1]  ;;  %v459_v40 = vrot.slane %v452_v11, 7  ;;  %v827_v5 = vmov 0.0  }
 0x164   : > { %v493_v8 = vld [vmem:[#allocation2 + $0x1a] sm:$0x1]  ;;  %v474_v9 = vld [vmem:[#allocation2 + $0x19] sm:$0x1]  ;;  %v531_v31 = vld [vmem:[#allocation2 + $0x1c] sm:$0x1]  ;;  %v575_v51 = vsel %vm460_vm2, %v574_v21, %v566_v25  ;;  %v556_v53 = vsel %vm460_vm2, %v555_v28, %v547_v27  ;;  %789 = vmatprep.subr.mxu1 %v827_v5  ;;  %791 = vmatprep.mubr.msk.f32.mxu1 %vm830_vm6, %v827_v5 }
 0x165   : > { %v502_v22 = vrot.slane %v493_v8, 5  ;;  %v483_v23 = vrot.slane %v474_v9, 5  ;;  %v512_v33 = vld [vmem:[#allocation2 + $0x1b] sm:$0x1]  ;;  %v454_v45 = vld [vmem:[#allocation2 + $0x18] sm:$0x1]  ;;  %v461_v58 = vsel %vm460_vm2, %v459_v40, %v451_v39 }
 0x166   : > { %v492_v12 = vld [vmem:[#allocation2 + $0x12] sm:$0x1]  ;;  %v473_v14 = vld [vmem:[#allocation2 + $0x11] sm:$0x1]  ;;  %v530_v16 = vld [vmem:[#allocation2 + $0x14] sm:$0x1] }
 0x167   : > { %v500_v17 = vrot.slane %v492_v12, 6  ;;  %v481_v18 = vrot.slane %v473_v14, 6  ;;  %v538_v19 = vrot.slane %v530_v16, 6  ;;  %v511_v20 = vld [vmem:[#allocation2 + $0x13] sm:$0x1]  ;;  %v540_v47 = vrot.slane %v531_v31, 5 }
 0x168   : > { %v519_v24 = vrot.slane %v511_v20, 6  ;;  %v568_v26 = vld [vmem:[#allocation2 + $0x16] sm:$0x1]  ;;  %v549_v34 = vld [vmem:[#allocation2 + $0x15] sm:$0x1]  ;;  %v521_v48 = vrot.slane %v512_v33, 5 }
 0x169   : > { %v501_v29 = vsel %vm463_vm3, %v500_v17, %v499_v13  ;;  %v482_v30 = vsel %vm463_vm3, %v481_v18, %v480_v15  ;;  %v539_v41 = vsel %vm463_vm3, %v538_v19, %v537_v32  ;;  %v576_v43 = vrot.slane %v568_v26, 6  ;;  %v453_v46 = vld [vmem:[#allocation2 + $0x10] sm:$0x1]  ;;  %v587_v49 = vld [vmem:[#allocation2 + $0x17] sm:$0x1] }
 0x16a   : > { %v503_v35 = vsel %vm466_vm4, %v502_v22, %v501_v29  ;;  %v484_v36 = vsel %vm466_vm4, %v483_v23, %v482_v30  ;;  %v520_v42 = vsel %vm463_vm3, %v519_v24, %v518_v37  ;;  %v557_v44 = vrot.slane %v549_v34, 6  ;;  %v569_v50 = vld [vmem:[#allocation2 + $0x1e] sm:$0x1]  ;;  %v550_v52 = vld [vmem:[#allocation2 + $0x1d] sm:$0x1] }
 0x16b   : > { %504 = vrot.lane.b32.xlu1 %v503_v35, %s823_s21  ;;  %485 = vrot.lane.b32.xlu0 %v484_v36, %s824_s22  ;;  %v593_v54 = vrot.slane %v586_v38, 7  ;;  %v462_v55 = vrot.slane %v453_v46, 6  ;;  %v541_v56 = vsel %vm466_vm4, %v540_v47, %v539_v41  ;;  %v522_v57 = vsel %vm466_vm4, %v521_v48, %v520_v42  ;;  %v585_v62 = vld [vmem:[#allocation2 + $0x7] sm:$0x1]  ;;  %v588_v4 = vld [vmem:[#allocation2 + $0x1f] sm:$0x1] }
 0x16c   : > { %v465_v59 = vrot.slane %v454_v45, 5  ;;  %v577_v60 = vsel %vm463_vm3, %v576_v43, %v575_v51  ;;  %v558_v61 = vsel %vm463_vm3, %v557_v44, %v556_v53  ;;  %v595_v63 = vrot.slane %v587_v49, 6  ;;  %v604_v19 = vld [vmem:[%s952_s3] sm:$0x3] }
 0x16d   : > { %v464_v0 = vsel %vm463_vm3, %v462_v55, %v461_v58  ;;  %v578_v1 = vrot.slane %v569_v50, 5  ;;  %v559_v2 = vrot.slane %v550_v52, 5  ;;  %v594_v8 = vsel %vm460_vm2, %v593_v54, %v585_v62 }
 0x16e   : > { %v467_v3 = vsel %vm466_vm4, %v465_v59, %v464_v0  ;;  %v596_v9 = vsel %vm463_vm3, %v595_v63, %v594_v8  ;;  %v597_v10 = vrot.slane %v588_v4, 5 }
 0x16f   : > { %542 = vrot.lane.b32.xlu1 %v541_v56, %s825_s23  ;;  %523 = vrot.lane.b32.xlu0 %v522_v57, %s826_s24  ;;  %470 = vst.msk [vmem:[#allocation3] sm:$0xf] %vm469_vm5, %v467_v3  ;;  %v579_v6 = vsel %vm466_vm4, %v578_v1, %v577_v60  ;;  %v560_v7 = vsel %vm466_vm4, %v559_v2, %v558_v61 }
 0x170   : > { %v598_v11 = vsel %vm466_vm4, %v597_v10, %v596_v9 }
 0x173   : > { %580 = vrot.lane.b32.xlu1 %v579_v6, %s828_s25  ;;  %561 = vrot.lane.b32.xlu0 %v560_v7, %s829_s26 }
 0x177   : > { %599 = vrot.lane.b32.xlu0 %v598_v11, %s831_s27 }
 0x1dd   : > { %v505_v12 = vpop.permute.xlu1 %504  ;;  %v486_v13 = vpop.permute.xlu0 %485 }
 0x1de   : > { %489 = vst.msk [vmem:[#allocation3] sm:$0xf] %vm488_vm7, %v486_v13 }
 0x1df   : > { %508 = vst.msk [vmem:[#allocation3] sm:$0xf] %vm507_vm8, %v505_v12 }
 0x1e1   : > { %v543_v14 = vpop.permute.xlu1 %542  ;;  %v524_v15 = vpop.permute.xlu0 %523 }
 0x1e2   : > { %527 = vst.msk [vmem:[#allocation3] sm:$0xf] %vm526_vm9, %v524_v15 }
 0x1e3   : > { %546 = vst.msk [vmem:[#allocation3] sm:$0xf] %vm545_vm10, %v543_v14 }
 0x1e5   : > { %v581_v16 = vpop.permute.xlu1 %580  ;;  %v562_v17 = vpop.permute.xlu0 %561 }
 0x1e6   : > { %565 = vst.msk [vmem:[#allocation3] sm:$0xf] %vm564_vm11, %v562_v17 }
 0x1e7   : > { %584 = vst.msk [vmem:[#allocation3] sm:$0xf] %vm583_vm12, %v581_v16 }
 0x1e9   : > { %v600_v18 = vpop.permute.xlu0 %599 }
 0x1ea   : > { %603 = vst.msk [vmem:[#allocation3] sm:$0xf] %vm602_vm13, %v600_v18 }
 0x1f1   : > { %v605_v20 = vld [vmem:[#allocation3] sm:$0xf] }
 0x1f2   : > { %790 = vmatpush3.msk.msra.mxu1 %vm610_vm14, %v605_v20 }
 0x1f3   : > { %792 = vmatmul.mubr.msk.f32.vlgmr.msra.gmra.mxu1 %vm606_vm15, %v604_v19 }
 0x2b3   : > { %v680_v21 = vpop.f32.mrf.mxu1 }
 0x2b4   : > { %685 = vst.msk [vmem:[%s222_s8] sm:$0x3] %vm684_vm0, %v680_v21 }
 0x2b5   : > { %v793_v22 = vpop.f32.mrf.mxu1 }
 0x2b6 PF: > { %s15_s18 = sadd.s32 1, %s820_s18  }
 0x2b7   : > { %p12_p4 = scmp.ge.s32.totalorder %s15_s18, 4  }
 0x2b9   :  { %14 = sbr.rel (!%p12_p4) target bundleno = 1 (0x1), region = 77 }

</bundles_post_ra>
